<compile_context>
chip_gen: v7x
topology: tpu7x:2x2x1
jax: 0.10.0
libtpu: 0.0.40
codegen_flags: <defaults>
</compile_context>

<pallas_src>
import math

import jax
import jax.numpy as jnp
from jax.experimental import pallas as pl
from jax.experimental.pallas import tpu as pltpu

LN_EPS = 1e-5  # torch.nn.LayerNorm default


# ---------------------------------------------------------------------------
# Pallas kernels (each program handles one batch tile)
# ---------------------------------------------------------------------------

def _sum_kernel(x_ref, o_ref):
    # x_ref: (Bt, N, D) bf16  ->  o_ref: (Bt, 1, D) f32 == x.sum(dim=1)
    o_ref[...] = jnp.sum(x_ref[...].astype(jnp.float32), axis=1, keepdims=True)


def _attention_pool_kernel(x_ref, wk_ref, bk_ref, gamma_ref, beta_ref, o_ref):
    # x_ref:      (Bt, N, Din)  bf16
    # wk_ref:     (Din, H)      bf16  (torch Linear(768, H).weight transposed)
    # bk_ref:     (1, H)        f32
    # gamma/beta: (1, H)        f32
    # o_ref:      (Bt, 1, H)    f32
    Bt, N, Din = x_ref.shape
    H = o_ref.shape[-1]

    # Fold the batch into the matmul M-dim: one [Bt*N, Din] x [Din, H] MXU op.
    # (Zero-cost layout view when N % 8 == 0 and Din % 128 == 0, e.g. Din=768.)
    x2 = x_ref[...].reshape(Bt * N, Din)
    k = jnp.dot(x2, wk_ref[...], preferred_element_type=jnp.float32) + bk_ref[...]

    # LayerNorm over the feature axis (f32 stats).
    mean = jnp.mean(k, axis=-1, keepdims=True)
    var = jnp.mean(jnp.square(k - mean), axis=-1, keepdims=True)
    k = (k - mean) * jax.lax.rsqrt(var + LN_EPS)

    # NOTE: in the PyTorch module q = softmax(Linear(768->1)(x), dim=-1) is a
    # softmax over a size-1 axis == 1.0, so q * k == k (query branch dropped).
    # gamma/beta commute with the node-sum: sum_n(k*g + b) = (sum_n k)*g + N*b.
    ksum = jnp.sum(k.reshape(Bt, N, H), axis=1)                    # (Bt, H)
    o_ref[...] = (ksum * gamma_ref[...] + N * beta_ref[...])[:, None, :]


def _self_attention_pool_kernel(x_ref, wq_ref, bq_ref, wk_ref, bk_ref,
                                wv_ref, bv_ref, wo_ref, bo_ref, o_ref):
    # Single-head MultiHeadAttention (head_size=1, att_size=H, dropout=0),
    # followed by sum over the node axis.
    # x_ref:            (Bt, N, H)  bf16
    # wq/wk/wv:         (H, H)      bf16   (1/sqrt(H) pre-folded into wq/bq)
    # bq/bk/bv:         (1, H)      f32
    # wo: (H, H) f32,   bo: (1, H)  f32    (applied after the node-sum)
    # o_ref:            (Bt, 1, H)  f32
    Bt, N, H = x_ref.shape

    x2 = x_ref[...].reshape(Bt * N, H)
    # Three separate (H,H) dots -> no lane-misaligned slicing of a fused (H,3H)
    # projection output when H < 128.
    q = (jnp.dot(x2, wq_ref[...], preferred_element_type=jnp.float32)
         + bq_ref[...]).reshape(Bt, N, H)
    k = (jnp.dot(x2, wk_ref[...], preferred_element_type=jnp.float32)
         + bk_ref[...]).reshape(Bt, N, H)
    v = (jnp.dot(x2, wv_ref[...], preferred_element_type=jnp.float32)
         + bv_ref[...]).reshape(Bt, N, H)

    # Attention scores + softmax (f32; EUP approx reciprocal — documented
    # accuracy tradeoff of ~1e-3 relative on the softmax probabilities).
    s = jnp.einsum('bqd,bkd->bqk', q, k, preferred_element_type=jnp.float32)
    s = s - jnp.max(s, axis=-1, keepdims=True)
    p = jnp.exp(s)
    p = p * pl.reciprocal(jnp.sum(p, axis=-1, keepdims=True), approx=True)

    y = jnp.einsum('bqk,bkd->bqd', p, v, preferred_element_type=jnp.float32)

    # Wo / bo commute with the node-sum: sum_n(y@Wo + bo) = (sum_n y)@Wo + N*bo
    # -> shrinks the Wo matmul from [Bt*N,H]x[H,H] to [Bt,H]x[H,H].
    y_sum = jnp.sum(y, axis=1)                                     # (Bt, H)
    out = jnp.dot(y_sum, wo_ref[...],
                  preferred_element_type=jnp.float32) + N * bo_ref[...]
    o_ref[...] = out[:, None, :]


# ---------------------------------------------------------------------------
# pallas_call wrapper
# ---------------------------------------------------------------------------

def _choose_batch_tile(B, N, D, itemsize, target_block_bytes=2 << 20):
    """Largest divisor of B s.t. the x block is <= ~2 MiB and (if B >= 2) the
    grid has >= 2 steps (double-buffered pipelining + v7x 2-TC sharding).
    Double-buffered blocks this small stay well under the v5e 16 MiB scoped
    VMEM default and the v7x 64 MiB physical VMEM."""
    per_batch = max(1, N * D * itemsize)
    bt = max(1, min(B, target_block_bytes // per_batch))
    if B >= 2:
        bt = max(1, min(bt, B // 2))
    while B % bt:
        bt -= 1
    return bt


def _run_pooling_kernel(kernel, x, params, out_feat, *, batch_tile=None):
    """One program per batch tile; params are passed as whole (untiled) arrays."""
    B, N, D = x.shape
    Bt = _choose_batch_tile(B, N, D, x.dtype.itemsize) if batch_tile is None else batch_tile
    assert B % Bt == 0, "batch_tile must divide batch"

    # x block covers the full (N, D) extent -> last two block dims equal the
    # full array dims, so the (8,128) constraint is satisfied for any Bt.
    in_specs = [pl.BlockSpec((Bt, N, D), lambda b: (b, 0, 0))]
    in_specs += [pl.BlockSpec(p.shape, lambda b, _n=p.ndim: (0,) * _n) for p in params]

    out = pl.pallas_call(
        kernel,
        grid=(B // Bt,),
        in_specs=in_specs,
        # 3-D output: (Bt, 1, F) blocks of a (B, 1, F) array — last two block
        # dims equal the full array dims (valid for any Bt), lane-dense in F.
        out_specs=pl.BlockSpec((Bt, 1, out_feat), lambda b: (b, 0, 0)),
        out_shape=jax.ShapeDtypeStruct((B, 1, out_feat), jnp.float32),
        compiler_params=pltpu.CompilerParams(
            dimension_semantics=("parallel",)),   # batch tiles are independent
    )(x, *params)
    return out.reshape(B, out_feat)


def prepare_self_attention_params(p, hidden_dim, stream_dtype=jnp.bfloat16):
    """One-time transform: fold 1/sqrt(att_size) into the Q projection
    (head_size=1 -> att_size=hidden_dim) and cast Q/K/V weights to the
    streaming dtype.  Wo/bo stay f32 (tiny; applied after the node-sum)."""
    scale = float(hidden_dim) ** -0.5
    return [
        (p['wq'] * scale).astype(stream_dtype), p['bq'] * scale,
        p['wk'].astype(stream_dtype), p['bk'],
        p['wv'].astype(stream_dtype), p['bv'],
        p['wo'], p['bo'],
    ]


def pooling_layer_forward(x, method, hidden_dim, params=None, *,
                          stream_dtype=jnp.bfloat16, batch_tile=None):
    if method == 'dummy':
        # Pure strided slice; XLA already does this optimally -> no Pallas kernel.
        return x[:, 0]

    # Stream the (large) activation in bf16; all accumulation is f32 in-kernel.
    x_s = x.astype(stream_dtype)

    if method == 'sum':
        return _run_pooling_kernel(_sum_kernel, x_s, [], x.shape[-1],
                                   batch_tile=batch_tile)
    if method == 'attention':
        # wq/bq (Linear(768->1)) are mathematically inert (size-1 softmax) -> not passed.
        p = [params['wk'].astype(stream_dtype), params['bk'],
             params['gamma'], params['beta']]
        return _run_pooling_kernel(_attention_pool_kernel, x_s, p, hidden_dim,
                                   batch_tile=batch_tile)
    if method == 'self_attention':
        p = prepare_self_attention_params(params, hidden_dim, stream_dtype)
        return _run_pooling_kernel(_self_attention_pool_kernel, x_s, p, hidden_dim,
                                   batch_tile=batch_tile)
    # TODO(synk): 'global_attention' needs torch_geometric GlobalAttention (undefined in source).
    raise NotImplementedError(method)


# ---------------------------------------------------------------------------
# deterministic parameter init (matches torch.nn.Linear / LayerNorm shapes)
# ---------------------------------------------------------------------------

def _linear_params(key, fan_in, fan_out):
    """Returns (W [fan_in, fan_out], b [1, fan_out]) — W is the torch weight transposed."""
    kw, kb = jax.random.split(key)
    bound = 1.0 / math.sqrt(fan_in)
    w = jax.random.uniform(kw, (fan_in, fan_out), jnp.float32, -bound, bound)
    b = jax.random.uniform(kb, (1, fan_out), jnp.float32, -bound, bound)
    return w, b


# ---------------------------------------------------------------------------
# pure-JAX references (mirror the PyTorch math; round_fn models bf16 streaming)
# ---------------------------------------------------------------------------

def _round_to(a, dtype=jnp.bfloat16):
    return a.astype(dtype).astype(jnp.float32)


def _ref_attention(x, p, round_fn=lambda a: a):
    xr = round_fn(x)
    q = jnp.einsum('bnd,dh->bnh', xr, round_fn(p['wq'])) + p['bq']        # (B, N, 1)
    q = jax.nn.softmax(q, axis=-1)                                        # == 1.0
    k = jnp.einsum('bnd,dh->bnh', xr, round_fn(p['wk'])) + p['bk']
    mean = jnp.mean(k, axis=-1, keepdims=True)
    var = jnp.mean(jnp.square(k - mean), axis=-1, keepdims=True)
    k = (k - mean) * jax.lax.rsqrt(var + LN_EPS)
    k = k * p['gamma'] + p['beta']
    return jnp.sum(q * k, axis=1)


def _ref_self_attention(x, p, hidden_dim, round_fn=lambda a: a):
    scale = float(hidden_dim) ** -0.5
    xr = round_fn(x)
    q = jnp.einsum('bnh,hd->bnd', xr, round_fn(p['wq'] * scale)) + p['bq'] * scale
    k = jnp.einsum('bnh,hd->bnd', xr, round_fn(p['wk'])) + p['bk']
    v = jnp.einsum('bnh,hd->bnd', xr, round_fn(p['wv'])) + p['bv']
    s = jnp.einsum('bqd,bkd->bqk', q, k)
    a = jax.nn.softmax(s, axis=-1)
    y = jnp.einsum('bqk,bkd->bqd', a, v)
    y = jnp.einsum('bnd,dh->bnh', y, p['wo']) + p['bo']
    return jnp.sum(y, axis=1)


# ---------------------------------------------------------------------------

if __name__ == "__main__":
    B, N, H, D_IN = 4, 8, 32, 768   # 768 is hard-coded in the module's query/key Linears

    key = jax.random.PRNGKey(0)
    k_x1, k_x2, k_attn, k_sa = jax.random.split(key, 4)
    x768 = jax.random.normal(k_x1, (B, N, D_IN), jnp.float32)   # for dummy/sum/attention
    x_h = jax.random.normal(k_x2, (B, N, H), jnp.float32)       # for self_attention

    # 'attention' params: Linear(768,1), Linear(768,H), LayerNorm(H)
    kq, kk = jax.random.split(k_attn)
    wq_w, bq = _linear_params(kq, D_IN, 1)
    wk_w, bk = _linear_params(kk, D_IN, H)
    attn_params = dict(
        wq=wq_w, bq=bq, wk=wk_w, bk=bk,
        gamma=jnp.ones((1, H), jnp.float32), beta=jnp.zeros((1, H), jnp.float32),
    )

    # 'self_attention' params: MultiHeadAttention(H, 0, 1)
    ks = jax.random.split(k_sa, 4)
    swq, sbq = _linear_params(ks[0], H, H)
    swk, sbk = _linear_params(ks[1], H, H)
    swv, sbv = _linear_params(ks[2], H, H)
    swo, sbo = _linear_params(ks[3], H, H)
    sa_params = dict(wq=swq, bq=sbq, wk=swk, bk=sbk, wv=swv, bv=sbv, wo=swo, bo=sbo)

    # --- run (Pallas kernels for sum/attention/self_attention; plain slice for dummy) ---
    out_dummy = jax.block_until_ready(pooling_layer_forward(x768, 'dummy', H))
    out_sum = jax.block_until_ready(pooling_layer_forward(x768, 'sum', H))
    out_attn = jax.block_until_ready(
        pooling_layer_forward(x768, 'attention', H, attn_params))
    out_sa = jax.block_until_ready(
        pooling_layer_forward(x_h, 'self_attention', H, sa_params))

    # --- correctness vs pure-JAX references (computed on the same bf16-rounded
    #     inputs/weights the kernels stream, so tolerances reflect kernel error) ---
    assert out_dummy.shape == (B, D_IN) and out_sum.shape == (B, D_IN)
    assert out_attn.shape == (B, H) and out_sa.shape == (B, H)
    assert jnp.allclose(out_dummy, x768[:, 0], atol=1e-6), "dummy mismatch"
    assert jnp.allclose(out_sum, jnp.sum(_round_to(x768), axis=1),
                        atol=1e-4), "sum mismatch"
    assert jnp.allclose(out_attn, _ref_attention(x768, attn_params, _round_to),
                        rtol=2e-3, atol=2e-3), "attention mismatch"
    # self_attention uses the EUP approximate reciprocal for the softmax denom.
    assert jnp.allclose(out_sa, _ref_self_attention(x_h, sa_params, H, _round_to),
                        rtol=1e-2, atol=1e-2), "self_attention mismatch"

    print("KERNEL_OK")
</pallas_src>

<mosaic_0001>
module attributes {stable_mosaic.version = 11 : i64} {
  func.func @_sum_kernel(%arg0: i32, %arg1: memref<2x8x768xbf16, #tpu.memory_space<vmem>>, %arg2: memref<2x1x768xf32, #tpu.memory_space<vmem>>) attributes {dimension_semantics = [#tpu.dimension_semantics<parallel>], iteration_bounds = array<i64: 2>, scalar_prefetch = 0 : i64, scratch_operands = 0 : i64, tpu.core_type = #tpu.core_type<tc>, window_params = [{transform_indices = @transform_0, window_bounds = array<i64: 2, 8, 768>}, {transform_indices = @transform_1, window_bounds = array<i64: 2, 1, 768>}]} {
    %c0 = arith.constant 0 : index
    %c0_0 = arith.constant 0 : index
    %c0_1 = arith.constant 0 : index
    %0 = vector.load %arg1[%c0, %c0_0, %c0_1] : memref<2x8x768xbf16, #tpu.memory_space<vmem>>, vector<2x8x768xbf16>
    %1 = arith.extf %0 : vector<2x8x768xbf16> to vector<2x8x768xf32>
    %cst = arith.constant dense<0.000000e+00> : vector<2x768xf32>
    %2 = vector.multi_reduction <add>, %1, %cst [1] : vector<2x8x768xf32> to vector<2x768xf32>
    %3 = vector.shape_cast %2 : vector<2x768xf32> to vector<2x1x768xf32>
    %c0_2 = arith.constant 0 : index
    %c0_3 = arith.constant 0 : index
    %c0_4 = arith.constant 0 : index
    %4 = vector.load %arg2[%c0_2, %c0_3, %c0_4] : memref<2x1x768xf32, #tpu.memory_space<vmem>>, vector<2x1x768xf32>
    tpu.vector_store %arg2[%c0_2, %c0_3, %c0_4], %3 {strides = array<i32>} : memref<2x1x768xf32, #tpu.memory_space<vmem>>, vector<2x1x768xf32>,
    return
  }
  func.func @transform_0(%arg0: i32) -> (i32, i32, i32) {
    %c0_i32 = arith.constant 0 : i32
    %c0_i32_0 = arith.constant 0 : i32
    %c0_i32_1 = arith.constant 0 : i32
    return %arg0, %c0_i32, %c0_i32_0 : i32, i32, i32
  }
  func.func @transform_1(%arg0: i32) -> (i32, i32, i32) {
    %c0_i32 = arith.constant 0 : i32
    %c0_i32_0 = arith.constant 0 : i32
    %c0_i32_1 = arith.constant 0 : i32
    return %arg0, %c0_i32, %c0_i32_0 : i32, i32, i32
  }
}

</mosaic_0001>

<bundles_post_ra>
// kernel: tpu_custom_call.1
= control target key start
LH: loop header
LB: loop body
LE: loop exit
PB: predicated region body
PF: predicated region fallthrough
CT: control target
= control target key end

     0   :  { %6 = vsyncpa [#allocation3], 0  ;;  %s786_s0 = inlined_call_operand.hbm [shape: bf16[4,8,768], index: 0, kind: input, shape index: {}]   ;;  %s787_s1 = inlined_call_operand.hbm [shape: f32[4,1,768], index: 1, kind: output, shape index: {}]  }
   0x1   :  { %8 = vsyncpa [#allocation3 + $0x1], 0 }
   0x2   :  { %9 = vsyncpa [#allocation4], 0 }
   0x3   :  { %11 = vsyncpa [#allocation4 + $0x1], 0  ;;  %s599_s6 = smov 0   ;;  %s601_s7 = smov 0  }
   0x4   :  { %s603_s8 = smov 0   ;;  %s605_s9 = smov 0  }
   0x5 LB: > { %s620_s10 = sadd.s32 4294967295, %s580_s9   ;;  %s416_s11 = sadd.s32 4294967294, %s580_s9   ;;  %s580_s9 = sphi %s605_s9, %s801_s9   ;;  %s576_s8 = sphi %s603_s8, %s800_s8   ;;  %s572_s7 = sphi %s601_s7, %s799_s7   ;;  %s568_s6 = sphi %s599_s6, %s798_s6  }
   0x6   : > { %s624_s12 = sadd.s32 1, %s580_s9   ;;  %s24_s13 = sadd.s32 1, %s576_s8 }
   0x7   : > { %s21_s14 = ssub.s32 %s580_s9, %s624_s12  ;;  %p31_p0 = scmp.ne.s32.totalorder %s576_s8, %s572_s7 }
   0x8   : > { %p22_p1 = scmp.eq.s32.totalorder %s21_s14, 0  ;;  %p32_p2 = scmp.eq.s32.totalorder %s580_s9, 0 }
   0x9   : > { %p37_p3 = scmp.ne.s32.totalorder %s572_s7, %s568_s6  ;;  %p38_p4 = scmp.eq.s32.totalorder %s620_s10, 0 }
   0xa   : > { %s636_s15 = scalar_select %p22_p1, %s576_s8, %s24_s13  }
   0xb   : > { %p33_p5 = por %p32_p2, %p31_p0  ;;  %p638_p6 = por %p38_p4, %p37_p3 }
   0xc   : > { %p61_p7 = scmp.eq.s32.totalorder %s620_s10, 1  ;;  %p67_p8 = scmp.eq.s32.totalorder %s416_s11, 1 }
   0xd   : > { %p445_p10 = scmp.lt.s32.totalorder %s580_s9, 2  ;;  %s87_s19 = sand.u32 1, %s576_s8  }
   0xe   : > { %p645_p11 = por %p61_p7, %p31_p0  ;;  %p649_p12 = por %p67_p8, %p37_p3 }
   0xf   : > { %s429_s20 = smul.u32 768, %s580_s9  ;;  %p660_p13 = pnand %p445_p10, %p33_p5 }
  0x10   : > { %s790_s17 = scalar_select %p645_p11, 1, 0 }
  0x11   : > { %s791_s18 = scalar_select %p649_p12, 1, 0 }
  0x12   : > { %s428_s21 = smul.u32 48, %s87_s19  ;;  %s658_s24 = scalar_lea.hbm %s786_s0, %s429_s20 }
  0x13   : > { %s666_s28 = scalar_lea.sflag [#allocation3], %s87_s19  ;;  %s484_s29 = scalar_lea.hbm %s658_s24, 768 }
  0x14   : > { %s91_s26 = scalar_lea.vmem [#allocation2], %s428_s21  ;;  %p485_p0 = scmp.ne.s32.totalorder %s658_s24, %s484_s29 }
  0x15   : > { %s99_s27 = sshll.u32 %s91_s26, 4  ;;  %p486_p1 = pneg %p660_p13  ;;  %s664_s27 = int_to_ptr.vmem [resolvable:$true] %s99_s27 }
  0x16   : > { %s489_s3 = scalar_lea.hbm %s786_s0, 1536  ;;  %p490_p4 = scmp.lt.u32.totalorder %s658_s24, %s786_s0 }
  0x17   : > { %p487_p2 = pnand %p486_p1, %p485_p0  ;;  %p491_p5 = scmp.lt.u32.totalorder %s489_s3, %s484_s29 }
  0x18   : > { %p493_p8 = scmp.lt.u32.totalorder %s484_s29, %s658_s24 }
  0x19   : > { %p488_p3 = pneg %p487_p2  ;;  %p492_p7 = por %p491_p5, %p490_p4 }
  0x1b   : > { %p494_p10 = por %p493_p8, %p492_p7 }
  0x1d   : > { %p495_p9 = pnand %p494_p10, %p488_p3 }
  0x1f   : > { %498 = shalt.err (!%p495_p9)
}
  0x20   : > { %s499_s11 = scalar_lea.vmem %s664_s27, 768  ;;  %s582_s13 = smov [#allocation2]  }
  0x21   : > { %p500_p0 = scmp.ne.s32.totalorder %s664_s27, %s499_s11  ;;  %s504_s14 = sshll.u32 %s582_s13, 4  ;;  %s505_s14 = int_to_ptr.vmem [resolvable:$false] %s504_s14 }
  0x22   : > { %s506_s19 = scalar_lea.vmem %s505_s14, 1536  ;;  %p507_p11 = scmp.lt.s32.totalorder %s664_s27, %s505_s14 }
  0x23   : > { %p502_p2 = pnand %p500_p0, %p486_p1  ;;  %p508_p4 = scmp.lt.s32.totalorder %s506_s19, %s499_s11 }
  0x25   : > { %p503_p12 = pneg %p502_p2  ;;  %p509_p5 = por %p508_p4, %p507_p11 }
  0x27   : > { %p510_p7 = pnand %p509_p5, %p503_p12 }
  0x29   : > { %513 = shalt.err (!%p510_p7)
}
  0x2a   : > { %s583_s20 = smov 384   ;;  %s584_s21 = smov 24  }
  0x2b   : > { %440 = dma.hbm_to_vmem [thread:$0]  (!%p660_p13), %s658_s24, 768, %s664_s27, %s666_s28, %s583_s20, %s583_s20, %s584_s21  }
  0x2c   : > { %p422_p9 = scmp.ge.s32.totalorder %s580_s9, 1  ;;  %p107_p1 = scmp.lt.s32.totalorder %s580_s9, 3 }
  0x2e   : > { %p108_p3 = pnand %p422_p9, %p107_p1 }
  0x2f   : > { %s697_s22 = sand.u32 (!%p108_p3), 1, %s572_s7  }
  0x30   : > { %111 = sbr.rel (%p108_p3) target bundleno = 111 (0x6f), region = 24  ;;  %s114_s26 = scalar_lea.sflag (!%p108_p3), [#allocation3], %s697_s22 }
  0x31   : > { %s430_s23 = smul.u32 (!%p108_p3), 48, %s697_s22 }
  0x33   : > { %s117_s29 = scalar_lea.vmem (!%p108_p3), [#allocation2], %s430_s23 }
  0x37   : > { %559 = dma.done.wait (%p638_p6), %s114_s26, 768  }
  0x38   : > { %561 = vsyncadd (%p638_p6), %s114_s26, 4294966528  ;;  %v246_v0 = vlaneseq  ;;  %v585_v1 = vmov 1966171168   ;;  %v138_v5 = vld [vmem:[%s117_s29] sm:$0xff]  ;;  %v139_v6 = vld [vmem:[%s117_s29 + $0x8] sm:$0xff]  ;;  %s431_s16 = smul.u32 12, %s697_s22 }
  0x39   : > { %v244_v2 = vunpack.c.l.s4 %v585_v1  ;;  %v140_v7 = vld [vmem:[%s117_s29 + $0x10] sm:$0xff]  ;;  %v144_v9 = vunpack.c.l.bf16 %v138_v5  ;;  %v145_v10 = vunpack.c.h.bf16 %v138_v5  ;;  %v146_v11 = vunpack.c.l.bf16 %v139_v6  ;;  %v141_v13 = vld [vmem:[%s117_s29 + $0x18] sm:$0xff]  ;;  %v708_v14 = vld [vmem:[%s117_s29 + $0x20] sm:$0xff]  ;;  %s432_s25 = smul.u32 192, %s620_s10  ;;  %s329_s3 = scalar_lea.sflag [#allocation4], %s697_s22 }
  0x3a   : > { %v247_v4 = vshrl.u32 %v246_v0, 7  ;;  %v147_v12 = vunpack.c.h.bf16 %v139_v6  ;;  %v148_v15 = vunpack.c.l.bf16 %v140_v7  ;;  %v149_v16 = vunpack.c.h.bf16 %v140_v7  ;;  %v710_v23 = vld [vmem:[%s117_s29 + $0x28] sm:$0xff]  ;;  %s135_s24 = scalar_lea.vmem [#allocation5], %s431_s16  ;;  %p795_p11 = scmp.ne.s32.totalorder %s790_s17, 0 }
  0x3b   : > { %v245_v3 = vunpack.c.0.s8 %v244_v2  ;;  %v150_v17 = vunpack.c.l.bf16 %v141_v13  ;;  %v151_v18 = vunpack.c.h.bf16 %v141_v13  ;;  %v156_v19 = vrot.slane %v144_v9, 4  ;;  %s343_s27 = sshll.u32 %s135_s24, 4  ;;  %s740_s2 = scalar_lea.hbm %s787_s1, %s432_s25  ;;  %s735_s27 = int_to_ptr.vmem [resolvable:$true] %s343_s27 }
  0x3c   : > { %v162_v20 = vrot.slane %v145_v10, 4  ;;  %v168_v21 = vrot.slane %v146_v11, 4  ;;  %v174_v22 = vrot.slane %v147_v12, 4  ;;  %v180_v24 = vrot.slane %v148_v15, 4  ;;  %s514_s4 = scalar_lea.vmem %s735_s27, 192  ;;  %s586_s10 = smov [#allocation5]  }
  0x3d   : > { %v706_v8 = vsub.s32 %v245_v3, %v247_v4  ;;  %v186_v25 = vrot.slane %v149_v16, 4  ;;  %v152_v26 = vunpack.c.l.bf16 %v708_v14  ;;  %v153_v27 = vunpack.c.h.bf16 %v708_v14  ;;  %p515_p6 = scmp.ne.s32.totalorder %s735_s27, %s514_s4  ;;  %s518_s5 = sshll.u32 %s586_s10, 4  ;;  %s519_s5 = int_to_ptr.vmem [resolvable:$false] %s518_s5 }
  0x3e   : > { %v157_v28 = vadd.f32 %v156_v19, %v144_v9  ;;  %v163_v29 = vadd.f32 %v162_v20, %v145_v10  ;;  %v169_v30 = vadd.f32 %v168_v21, %v146_v11  ;;  %v175_v31 = vadd.f32 %v174_v22, %v147_v12  ;;  %s520_s11 = scalar_lea.vmem %s519_s5, 384  ;;  %p521_p8 = scmp.lt.s32.totalorder %s735_s27, %s519_s5 }
  0x3f   : > { %v181_v32 = vadd.f32 %v180_v24, %v148_v15  ;;  %v187_v33 = vadd.f32 %v186_v25, %v149_v16  ;;  %v154_v34 = vunpack.c.l.bf16 %v710_v23  ;;  %v155_v35 = vunpack.c.h.bf16 %v710_v23  ;;  %p516_p12 = pnand %p515_p6, %p795_p11  ;;  %p522_p10 = scmp.lt.s32.totalorder %s520_s11, %s514_s4 }
  0x40   : > { %v158_v36 = vrot.slane %v157_v28, 2  ;;  %v164_v37 = vrot.slane %v163_v29, 2  ;;  %v170_v38 = vrot.slane %v169_v30, 2  ;;  %v176_v39 = vrot.slane %v175_v31, 2 }
  0x41   : > { %v182_v40 = vrot.slane %v181_v32, 2  ;;  %v188_v41 = vrot.slane %v187_v33, 2  ;;  %v192_v42 = vrot.slane %v150_v17, 4  ;;  %v198_v43 = vrot.slane %v151_v18, 4  ;;  %p517_p13 = pneg %p516_p12  ;;  %p523_p0 = por %p522_p10, %p521_p8 }
  0x42   : > { %v159_v44 = vadd.f32 %v158_v36, %v157_v28  ;;  %v165_v45 = vadd.f32 %v164_v37, %v163_v29  ;;  %v171_v46 = vadd.f32 %v170_v38, %v169_v30  ;;  %v177_v47 = vadd.f32 %v176_v39, %v175_v31 }
  0x43   : > { %v183_v48 = vadd.f32 %v182_v40, %v181_v32  ;;  %v189_v49 = vadd.f32 %v188_v41, %v187_v33  ;;  %v193_v50 = vadd.f32 %v192_v42, %v150_v17  ;;  %v199_v51 = vadd.f32 %v198_v43, %v151_v18  ;;  %p524_p2 = pnand %p523_p0, %p517_p13 }
  0x44   : > { %v160_v52 = vrot.slane %v159_v44, 1  ;;  %v166_v53 = vrot.slane %v165_v45, 1  ;;  %v172_v54 = vrot.slane %v171_v46, 1  ;;  %v178_v55 = vrot.slane %v177_v47, 1 }
  0x45   : > { %v184_v56 = vrot.slane %v183_v48, 1  ;;  %v190_v57 = vrot.slane %v189_v49, 1  ;;  %v194_v58 = vrot.slane %v193_v50, 2  ;;  %v200_v59 = vrot.slane %v199_v51, 2 }
  0x46   : > { %v161_v60 = vadd.f32 %v160_v52, %v159_v44  ;;  %v167_v61 = vadd.f32 %v166_v53, %v165_v45  ;;  %v173_v62 = vadd.f32 %v172_v54, %v171_v46  ;;  %v179_v63 = vadd.f32 %v178_v55, %v177_v47 }
  0x47   : > { %v185_v1 = vadd.f32 %v184_v56, %v183_v48  ;;  %v191_v2 = vadd.f32 %v190_v57, %v189_v49  ;;  %v195_v3 = vadd.f32 %v194_v58, %v193_v50  ;;  %v201_v4 = vadd.f32 %v200_v59, %v199_v51 }
  0x48   : > { %v240_v5 = vcombine.low %v161_v60, %v167_v61  ;;  %v241_v6 = vcombine.low %v173_v62, %v179_v63  ;;  %v204_v7 = vrot.slane %v152_v26, 4  ;;  %v210_v9 = vrot.slane %v153_v27, 4 }
  0x49   : > { %v242_v10 = vcombine.low %v185_v1, %v191_v2  ;;  %v196_v11 = vrot.slane %v195_v3, 1  ;;  %v202_v12 = vrot.slane %v201_v4, 1  ;;  %v216_v13 = vrot.slane %v154_v34, 4 }
  0x4a   : > { %v249_v14 = vrot.slane %v240_v5, %v706_v8  ;;  %v256_v15 = vrot.slane %v241_v6, %v706_v8  ;;  %v205_v16 = vadd.f32 %v204_v7, %v152_v26  ;;  %v211_v17 = vadd.f32 %v210_v9, %v153_v27 }
  0x4b   : > { %v263_v18 = vrot.slane %v242_v10, %v706_v8  ;;  %v197_v19 = vadd.f32 %v196_v11, %v195_v3  ;;  %v203_v20 = vadd.f32 %v202_v12, %v201_v4  ;;  %v217_v21 = vadd.f32 %v216_v13, %v154_v34 }
  0x4c   : > { %v264_v22 = vcombine.low %v249_v14, %v256_v15  ;;  %v206_v23 = vrot.slane %v205_v16, 2  ;;  %v212_v24 = vrot.slane %v211_v17, 2  ;;  %v222_v25 = vrot.slane %v155_v35, 4 }
  0x4d   : > { %v278_v28 = vrot.slane %v263_v18, %v706_v8  ;;  %v218_v29 = vrot.slane %v217_v21, 2  ;;  %vm723_vm0 = vcmp.lt.s32.totalorder %v246_v0, 768  ;;  %v280_v36 = vcombine.low %v197_v19, %v203_v20 }
  0x4e   : > { %v271_v30 = vrot.slane %v264_v22, %v706_v8  ;;  %v207_v31 = vadd.f32 %v206_v23, %v205_v16  ;;  %v213_v32 = vadd.f32 %v212_v24, %v211_v17  ;;  %v223_v33 = vadd.f32 %v222_v25, %v155_v35 }
  0x4f   : > { %v219_v27 = vadd.f32 %v218_v29, %v217_v21  ;;  %v289_v45 = vrot.slane %v280_v36, %v706_v8 }
  0x50   : > { %v279_v34 = vcombine.low %v271_v30, %v278_v28  ;;  %v208_v37 = vrot.slane %v207_v31, 1  ;;  %v214_v38 = vrot.slane %v213_v32, 1  ;;  %v224_v39 = vrot.slane %v223_v33, 2 }
  0x51   : > { %v220_v40 = vrot.slane %v219_v27, 1 }
  0x52   : > { %326 = vst.msk [vmem:[%s135_s24] sm:$0x3f] %vm723_vm0, %v279_v34  ;;  %v209_v41 = vadd.f32 %v208_v37, %v207_v31  ;;  %v215_v42 = vadd.f32 %v214_v38, %v213_v32  ;;  %v225_v35 = vadd.f32 %v224_v39, %v223_v33 }
  0x53   : > { %v221_v43 = vadd.f32 %v220_v40, %v219_v27 }
  0x54   : > { %v226_v0 = vrot.slane %v225_v35, 1  ;;  %v281_v44 = vcombine.low %v209_v41, %v215_v42 }
  0x56   : > { %v227_v46 = vadd.f32 %v226_v0, %v225_v35  ;;  %v296_v47 = vrot.slane %v281_v44, %v706_v8 }
  0x58   : > { %v282_v48 = vcombine.low %v221_v43, %v227_v46  ;;  %v304_v49 = vcombine.low %v289_v45, %v296_v47 }
  0x5a   : > { %v303_v50 = vrot.slane %v282_v48, %v706_v8  ;;  %v311_v51 = vrot.slane %v304_v49, %v706_v8 }
  0x5c   : > { %v318_v52 = vrot.slane %v303_v50, %v706_v8 }
  0x5e   : > { %v319_v53 = vcombine.low %v311_v51, %v318_v52 }
  0x60   : > { %327 = vst.msk [vmem:[%s135_s24 + $0x6] sm:$0x3f] %vm723_vm0, %v319_v53 }
  0x61   : > { %527 = shalt.err (!%p524_p2)
}
  0x62   : > { %s528_s13 = scalar_lea.hbm %s740_s2, 192  ;;  %s532_s20 = scalar_lea.hbm %s787_s1, 384 }
  0x63   : > { %p529_p4 = scmp.ne.s32.totalorder %s740_s2, %s528_s13  ;;  %p533_p9 = scmp.lt.u32.totalorder %s740_s2, %s787_s1 }
  0x64   : > { %p534_p1 = scmp.lt.u32.totalorder %s532_s20, %s528_s13  ;;  %p536_p6 = scmp.lt.u32.totalorder %s528_s13, %s740_s2 }
  0x65   : > { %p530_p5 = pnand %p529_p4, %p795_p11 }
  0x66   : > { %p535_p3 = por %p534_p1, %p533_p9 }
  0x67   : > { %p531_p7 = pneg %p530_p5 }
  0x68   : > { %p537_p12 = por %p536_p6, %p535_p3 }
  0x6a   : > { %p538_p13 = pnand %p537_p12, %p531_p7 }
  0x6c   : > { %541 = shalt.err (!%p538_p13)
}
  0x6d   : > { %s587_s26 = smov 96   ;;  %s588_s29 = smov 6  }
  0x6e   : > { %435 = dma.vmem_to_hbm [thread:$0]  (%p795_p11), %s735_s27, 192, %s740_s2, %s329_s3, %s587_s26, %s587_s26, %s588_s29  }
  0x6f PF: > { %s358_s16 = sand.u32 1, %s568_s6   ;;  %p796_p8 = scmp.ne.s32.totalorder %s791_s18, 0 }
  0x70   : > { %p797_p10 = scmp.ge.s32.totalorder %s580_s9, 2  ;;  %s359_s24 = scalar_lea.sflag [#allocation4], %s358_s16 }
  0x72   : > { %p442_p0 = pnand %p797_p10, %p796_p8 }
  0x74   : > { %563 = dma.done.wait (!%p442_p0), %s359_s24, 192  }
  0x75   : > { %565 = vsyncadd (!%p442_p0), %s359_s24, 4294967104  ;;  %p14_p2 = scmp.ge.s32.totalorder %s624_s12, 4   ;;  %s798_s6 = smov %s572_s7 }
  0x76   : > { %s799_s7 = smov %s576_s8  ;;  %s800_s8 = smov %s636_s15 }
  0x77   : > { %s801_s9 = smov %s624_s12  ;;  %16 = sbr.rel (!%p14_p2) target bundleno = 5 (0x5), region = 69 }
  0x7e   :  { %364 = vsyncpa [#allocation3], 1 }
  0x7f   :  { %366 = vsyncpa [#allocation3 + $0x1], 1 }
  0x80   :  { %367 = vsyncpa [#allocation4], 1 }
  0x81   :  { %369 = vsyncpa [#allocation4 + $0x1], 1 }

</bundles_post_ra>
